<compile_context>
chip_gen: v7x
topology: tpu7x:2x2x1
jax: 0.10.0
libtpu: 0.0.40
codegen_flags: <defaults>
</compile_context>

<pallas_src>
import functools

import jax
import jax.numpy as jnp
from jax.experimental import pallas as pl
from jax.experimental.pallas import tpu as pltpu  # noqa: F401  (TPU backend import)


# ----------------------------------------------------------------------------
# Pallas kernel: fused MLP (Linear+ReLU x2) + fused (action|value) head.
# Everything fits in VMEM at these sizes, so we use whole-array blocks
# (block_shape == full array shape, which satisfies the (8,128) rule).
# ----------------------------------------------------------------------------
def policy_fwd_kernel(
    x_ref,     # (B, D_in)
    w1_ref,    # (D_in, H1)
    w2_ref,    # (H1, H2)
    wh_ref,    # (H2, HEAD_PAD)   fused [action | value | zero-pad] head weights
    b_ref,     # (1, H1 + H2 + HEAD_PAD)  packed biases [b1 | b2 | bh]
    out_ref,   # out: (B, HEAD_PAD)       fused [action | value | zero-pad] output
    *,
    h1,
    h2,
):
    x = x_ref[...]
    b = b_ref[...]                      # single tiny load; static slices below
    b1 = b[:, :h1]
    b2 = b[:, h1:h1 + h2]
    bh = b[:, h1 + h2:]

    # hidden layer 1: Linear + ReLU
    h = jnp.dot(x, w1_ref[...], preferred_element_type=jnp.float32) + b1
    h = jnp.maximum(h, 0.0)

    # hidden layer 2: Linear + ReLU
    h = jnp.dot(h, w2_ref[...], preferred_element_type=jnp.float32) + b2
    h = jnp.maximum(h, 0.0)

    # fused action + value head (single MXU op, lane-dense unmasked store)
    out_ref[...] = (
        jnp.dot(h, wh_ref[...], preferred_element_type=jnp.float32) + bh
    )


def _pack_params(params, n_actions, output_dim):
    """Fuse the two heads column-wise, pad to a lane-dense width, pack biases."""
    w1, b1, w2, b2, wa, ba, wv, bv = params
    ao = n_actions * output_dim
    head_width = ao + 1                          # [action logits | value]
    head_pad = pl.cdiv(head_width, 128) * 128    # lane-dense output width

    wh = jnp.concatenate([wa, wv], axis=1)       # (H2, ao+1)
    bh = jnp.concatenate([ba, bv], axis=1)       # (1, ao+1)
    pad = head_pad - head_width
    wh = jnp.pad(wh, ((0, 0), (0, pad)))
    bh = jnp.pad(bh, ((0, 0), (0, pad)))

    bias = jnp.concatenate([b1, b2, bh], axis=1)  # (1, H1 + H2 + head_pad)
    return w1, w2, wh, bias, head_pad


@functools.partial(jax.jit, static_argnums=(2, 3))
def policy_forward(x, params, n_actions, output_dim):
    """Runs the fused Policy forward. Returns (value, action_weights).

    value:          (B, 1)
    action_weights: (B, n_actions, output_dim)  (same as torch .view semantics)
    """
    B = x.shape[0]
    ao = n_actions * output_dim
    w1, w2, wh, bias, head_pad = _pack_params(params, n_actions, output_dim)
    h1, h2 = w1.shape[1], w2.shape[1]

    full = lambda shape: pl.BlockSpec(shape, lambda: tuple(0 for _ in shape))

    # NOTE: at B=8 the whole problem is one kernel invocation. If batch is
    # ever scaled up (>=128 rows), tile only the batch axis with a grid,
    # give weight BlockSpecs constant index_maps, and mark that axis
    # "parallel" so v7x's second TensorCore is engaged.
    out = pl.pallas_call(
        functools.partial(policy_fwd_kernel, h1=h1, h2=h2),
        out_shape=jax.ShapeDtypeStruct((B, head_pad), jnp.float32),
        grid=(),
        in_specs=[
            full(x.shape),
            full(w1.shape),
            full(w2.shape),
            full(wh.shape),
            full(bias.shape),
        ],
        out_specs=full((B, head_pad)),
    )(x, w1, w2, wh, bias)

    # torch: action_weights.view(B, len(action_values), output_dim)
    action_weights = out[:, :ao].reshape(B, n_actions, output_dim)
    value = out[:, ao:ao + 1]
    return value, action_weights


# ----------------------------------------------------------------------------
# Deterministic parameter construction (synthetic; no checkpoint loading).
# ----------------------------------------------------------------------------
def make_params(key, input_dim, policy_size, n_actions, output_dim):
    h1, h2 = policy_size
    keys = jax.random.split(key, 8)

    def lin(kw, kb, fan_in, fan_out):
        # Uniform(-1/sqrt(fan_in), 1/sqrt(fan_in)), like torch default Linear init.
        bound = 1.0 / jnp.sqrt(jnp.float32(fan_in))
        w = jax.random.uniform(kw, (fan_in, fan_out), jnp.float32, -bound, bound)
        b = jax.random.uniform(kb, (1, fan_out), jnp.float32, -bound, bound)
        return w, b

    w1, b1 = lin(keys[0], keys[1], input_dim, h1)
    w2, b2 = lin(keys[2], keys[3], h1, h2)
    wa, ba = lin(keys[4], keys[5], h2, n_actions * output_dim)
    wv, bv = lin(keys[6], keys[7], h2, 1)
    return (w1, b1, w2, b2, wa, ba, wv, bv)


def policy_forward_ref(x, params, n_actions, output_dim):
    """Pure-JAX reference for correctness checking."""
    w1, b1, w2, b2, wa, ba, wv, bv = params
    h = jnp.maximum(x @ w1 + b1, 0.0)
    h = jnp.maximum(h @ w2 + b2, 0.0)
    aw = (h @ wa + ba).reshape(x.shape[0], n_actions, output_dim)
    v = h @ wv + bv
    return v, aw


if __name__ == "__main__":
    # Small shapes consistent with the module's forward.
    B = 8
    input_dim = 32
    policy_size = (64, 32)
    action_values = (-1.0, 0.0, 1.0)   # len == 3
    n_actions = len(action_values)
    output_dim = 4

    key = jax.random.PRNGKey(0)
    kx, kp = jax.random.split(key)
    x = jax.random.normal(kx, (B, input_dim), jnp.float32)
    params = make_params(kp, input_dim, policy_size, n_actions, output_dim)

    value, action_weights = policy_forward(x, params, n_actions, output_dim)
    value = jax.block_until_ready(value)
    action_weights = jax.block_until_ready(action_weights)

    v_ref, aw_ref = policy_forward_ref(x, params, n_actions, output_dim)

    assert value.shape == (B, 1)
    assert action_weights.shape == (B, n_actions, output_dim)
    assert jnp.allclose(value, v_ref, atol=1e-5, rtol=1e-5)
    assert jnp.allclose(action_weights, aw_ref, atol=1e-5, rtol=1e-5)

    print("KERNEL_OK")
</pallas_src>

<mosaic_0001>
module attributes {stable_mosaic.version = 11 : i64} {
  func.func @policy_fwd_kernel(%arg0: memref<8x32xf32, #tpu.memory_space<vmem>>, %arg1: memref<32x64xf32, #tpu.memory_space<vmem>>, %arg2: memref<64x32xf32, #tpu.memory_space<vmem>>, %arg3: memref<32x128xf32, #tpu.memory_space<vmem>>, %arg4: memref<1x224xf32, #tpu.memory_space<vmem>>, %arg5: memref<8x128xf32, #tpu.memory_space<vmem>>) attributes {dimension_semantics = [], scalar_prefetch = 0 : i64, scratch_operands = 0 : i64, tpu.core_type = #tpu.core_type<tc>} {
    %c0 = arith.constant 0 : index
    %c0_0 = arith.constant 0 : index
    %0 = vector.load %arg0[%c0, %c0_0] : memref<8x32xf32, #tpu.memory_space<vmem>>, vector<8x32xf32>
    %c0_1 = arith.constant 0 : index
    %c0_2 = arith.constant 0 : index
    %1 = vector.load %arg4[%c0_1, %c0_2] : memref<1x224xf32, #tpu.memory_space<vmem>>, vector<1x224xf32>
    %2 = vector.extract_strided_slice %1 {offsets = [0, 0], sizes = [1, 64], strides = [1, 1]} : vector<1x224xf32> to vector<1x64xf32>
    %3 = vector.extract_strided_slice %1 {offsets = [0, 64], sizes = [1, 32], strides = [1, 1]} : vector<1x224xf32> to vector<1x32xf32>
    %4 = vector.extract_strided_slice %1 {offsets = [0, 96], sizes = [1, 128], strides = [1, 1]} : vector<1x224xf32> to vector<1x128xf32>
    %c0_3 = arith.constant 0 : index
    %c0_4 = arith.constant 0 : index
    %5 = vector.load %arg1[%c0_3, %c0_4] : memref<32x64xf32, #tpu.memory_space<vmem>>, vector<32x64xf32>
    %cst = arith.constant dense<0.000000e+00> : vector<8x64xf32>
    %6 = tpu.matmul %0, %5, %cst {dimension_numbers = #tpu.dot_dimension_numbers<[1], [0], [0], [1], [0, 0, 1, 1], [], []>} : vector<8x32xf32>, vector<32x64xf32>, vector<8x64xf32> -> vector<8x64xf32>
    %7 = vector.broadcast %2 : vector<1x64xf32> to vector<8x64xf32>
    %8 = arith.addf %6, %7 : vector<8x64xf32>
    %cst_5 = arith.constant 0.000000e+00 : f32
    %9 = vector.broadcast %cst_5 : f32 to vector<8x64xf32>
    %10 = arith.maximumf %8, %9 : vector<8x64xf32>
    %c0_6 = arith.constant 0 : index
    %c0_7 = arith.constant 0 : index
    %11 = vector.load %arg2[%c0_6, %c0_7] : memref<64x32xf32, #tpu.memory_space<vmem>>, vector<64x32xf32>
    %cst_8 = arith.constant dense<0.000000e+00> : vector<8x32xf32>
    %12 = tpu.matmul %10, %11, %cst_8 {dimension_numbers = #tpu.dot_dimension_numbers<[1], [0], [0], [1], [0, 0, 1, 1], [], []>} : vector<8x64xf32>, vector<64x32xf32>, vector<8x32xf32> -> vector<8x32xf32>
    %13 = vector.broadcast %3 : vector<1x32xf32> to vector<8x32xf32>
    %14 = arith.addf %12, %13 : vector<8x32xf32>
    %cst_9 = arith.constant 0.000000e+00 : f32
    %15 = vector.broadcast %cst_9 : f32 to vector<8x32xf32>
    %16 = arith.maximumf %14, %15 : vector<8x32xf32>
    %c0_10 = arith.constant 0 : index
    %c0_11 = arith.constant 0 : index
    %17 = vector.load %arg3[%c0_10, %c0_11] : memref<32x128xf32, #tpu.memory_space<vmem>>, vector<32x128xf32>
    %cst_12 = arith.constant dense<0.000000e+00> : vector<8x128xf32>
    %18 = tpu.matmul %16, %17, %cst_12 {dimension_numbers = #tpu.dot_dimension_numbers<[1], [0], [0], [1], [0, 0, 1, 1], [], []>} : vector<8x32xf32>, vector<32x128xf32>, vector<8x128xf32> -> vector<8x128xf32>
    %19 = vector.broadcast %4 : vector<1x128xf32> to vector<8x128xf32>
    %20 = arith.addf %18, %19 : vector<8x128xf32>
    %c0_13 = arith.constant 0 : index
    %c0_14 = arith.constant 0 : index
    %21 = vector.load %arg5[%c0_13, %c0_14] : memref<8x128xf32, #tpu.memory_space<vmem>>, vector<8x128xf32>
    tpu.vector_store %arg5[%c0_13, %c0_14], %20 {strides = array<i32>} : memref<8x128xf32, #tpu.memory_space<vmem>>, vector<8x128xf32>,
    return
  }
}

</mosaic_0001>

<bundles_post_ra>
// kernel: policy_forward.1
= control target key start
LH: loop header
LB: loop body
LE: loop exit
PB: predicated region body
PF: predicated region fallthrough
CT: control target
= control target key end

     0   :  { %v377_v0 = vmov 0.0|0.0   ;;  %vm378_vm0 = vmmov 0   ;;  %v379_v4 = vmov 0.0   ;;  %vm32_vm1 = vcmask 261120   ;;  %s380_s19 = smov 64   ;;  %s381_s26 = smov 32   ;;  %s475_s1 = inlined_call_operand.vmem [shape: f32[32,64], index: 1, kind: input, shape index: {}]   ;;  %s476_s2 = inlined_call_operand.vmem [shape: f32[64,32], index: 2, kind: input, shape index: {}]   ;;  %s477_s0 = inlined_call_operand.vmem [shape: f32[8,32], index: 0, kind: input, shape index: {}]   ;;  %s478_s4 = inlined_call_operand.vmem [shape: f32[1,224], index: 4, kind: input, shape index: {}]   ;;  %s479_s3 = inlined_call_operand.vmem [shape: f32[32,128], index: 3, kind: input, shape index: {}]   ;;  %s480_s5 = inlined_call_operand.vmem [shape: f32[8,128], index: 5, kind: output, shape index: {}]  }
   0x1   :  { %348 = vmatprep.subr.bf16.mxu0 %v377_v0  ;;  %v22_v1 = vld [vmem:[%s475_s1] sm:$0xff]  ;;  %v23_v2 = vld [vmem:[%s475_s1 + $0x8] sm:$0xff]  ;;  %v24_v3 = vld [vmem:[%s475_s1 + $0x10] sm:$0xff]  ;;  %315 = vmatprep.mubr.msk.f32.mxu0 %vm378_vm0, %v379_v4  ;;  %v27_v18 = vlaneseq  ;;  %vm118_vm2 = vcmask 523264  }
   0x2   :  { %v349_v5 = vpack.c.bf16 %v23_v2, %v22_v1  ;;  %v25_v6 = vld [vmem:[%s475_s1 + $0x18] sm:$0xff]  ;;  %354 = vmatprep.subr.bf16.mxu1 %v377_v0  ;;  %v107_v7 = vld [vmem:[%s476_s2] sm:$0xff]  ;;  %334 = vmatprep.mubr.msk.f32.mxu1 %vm378_vm0, %v379_v4  ;;  %v108_v8 = vld [vmem:[%s476_s2 + $0x8] sm:$0xff] }
   0x3   :  { %v109_v9 = vld [vmem:[%s476_s2 + $0x10] sm:$0xff]  ;;  %v110_v10 = vld [vmem:[%s476_s2 + $0x18] sm:$0xff]  ;;  %v352_v11 = vpack.c.bf16 %v25_v6, %v24_v3  ;;  %v355_v12 = vpack.c.bf16 %v108_v8, %v107_v7  ;;  %v111_v14 = vld [vmem:[%s476_s2 + $0x20] sm:$0xff]  ;;  %v28_v19 = vshrl.u32 %v27_v18, 7 }
   0x4   :  { %350 = vmatpush3.bf16.msra.mxu0 %v349_v5  ;;  %v358_v13 = vpack.c.bf16 %v110_v10, %v109_v9  ;;  %v112_v15 = vld [vmem:[%s476_s2 + $0x28] sm:$0xff]  ;;  %v20_v16 = vld [vmem:[%s477_s0] sm:$0xff]  ;;  %v113_v20 = vld [vmem:[%s476_s2 + $0x30] sm:$0xff] }
   0x5   :  { %351 = vmatprep.subr.bf16.mxu0 %v377_v0  ;;  %356 = vmatpush3.bf16.msra.mxu1 %v355_v12  ;;  %v361_v17 = vpack.c.bf16 %v112_v15, %v111_v14  ;;  %v114_v21 = vld [vmem:[%s476_s2 + $0x38] sm:$0xff]  ;;  %v29_v22 = vsub.s32 0, %v28_v19  ;;  %v21_v24 = vld [vmem:[%s478_s4] sm:$0x3]  ;;  %v194_v27 = vld [vmem:[%s479_s3 + $0x8] sm:$0xff]  ;;  %v199_v36 = vsub.s32 1, %v28_v19 }
   0x6   :  { %357 = vmatprep.subr.bf16.mxu1 %v377_v0  ;;  %v364_v23 = vpack.c.bf16 %v114_v21, %v113_v20  ;;  %v193_v26 = vld [vmem:[%s479_s3] sm:$0xff]  ;;  %v195_v33 = vld [vmem:[%s479_s3 + $0x10] sm:$0xff]  ;;  %v196_v34 = vld [vmem:[%s479_s3 + $0x18] sm:$0xff] }
   0x7   :  { %v30_v25 = vrot.slane %v21_v24, %v29_v22  ;;  %v367_v28 = vpack.c.bf16 %v194_v27, %v193_v26  ;;  %v370_v35 = vpack.c.bf16 %v196_v34, %v195_v33  ;;  %v200_v37 = vrot.slane %v21_v24, %v199_v36 }
   0x8   :  { %353 = vmatpush3.bf16.msra.mxu0 %v352_v11 }
   0x9   :  { %366 = vmatprep.subr.bf16.mxu0 %v377_v0  ;;  %359 = vmatpush3.bf16.msra.mxu1 %v358_v13 }
   0xa   :  { %360 = vmatprep.subr.bf16.mxu1 %v377_v0  ;;  %115 = vrot.lane.b32.xlu0 %v30_v25, %s380_s19 }
   0xb   :  { %316 = vmatmul.mubr.msk.f32.vlgmr.msra.gmra.mrb[0].mxu0 %vm32_vm1, %v20_v16  ;;  %203 = vrot.lane.b32.xlu1 %v200_v37, %s381_s26 }
   0xc   :  { %345 = vmatprep.mubr.msk.f32.mxu0 %vm378_vm0, %v379_v4  ;;  %368 = vmatpush3.bf16.msra.mxu0 %v367_v28 }
   0xd   :  { %362 = vmatpush3.bf16.msra.mxu1 %v361_v17  ;;  %369 = vmatprep.subr.bf16.mxu0 %v377_v0 }
   0xe   :  { %363 = vmatprep.subr.bf16.mxu1 %v377_v0  ;;  %201 = vrot.lane.b32.xlu0 %v30_v25, %s381_s26 }
  0x10   :  { %371 = vmatpush3.bf16.msra.mxu0 %v370_v35 }
  0x11   :  { %365 = vmatpush3.bf16.msra.mxu1 %v364_v23 }
  0x7c   :  { %v116_v38 = vpop.permute.xlu0 %115 }
  0x7d   :  { %v204_v43 = vpop.permute.xlu1 %203 }
  0x80   :  { %v202_v44 = vpop.permute.xlu0 %201 }
  0x81   :  { %v205_v45 = vsel %vm32_vm1, %v202_v44, %v204_v43 }
  0xde   :  { %v102_v29 = vpop.f32.mrb[0].mxu0 }
  0xdf   :  { %v103_v30 = vadd.f32 %v102_v29, %v30_v25  ;;  %v317_v31 = vpop.f32.mrb[1].mxu0 }
  0xe1   :  { %v106_v32 = vmax.f32 %v103_v30, 0.0 }
  0xe3   :  { %335 = vmatmul.mubr.msk.f32.vlgmr.msra.gmra.mrb[0].mxu1 %vm118_vm2, %v106_v32 }
 0x1b6   :  { %v188_v39 = vpop.f32.mrb[0].mxu1 }
 0x1b7   :  { %v189_v40 = vadd.f32 %v188_v39, %v116_v38  ;;  %v336_v41 = vpop.f32.mrb[1].mxu1 }
 0x1b9   :  { %v192_v42 = vmax.f32 %v189_v40, 0.0 }
 0x1bb   :  { %346 = vmatmul.mubr.msk.f32.vlgmr.msra.gmra.mrb[2].mxu0 %vm32_vm1, %v192_v42 }
 0x28e   :  { %v276_v46 = vpop.f32.mrb[2].mxu0 }
 0x28f   :  { %v277_v47 = vadd.f32 %v276_v46, %v205_v45  ;;  %v347_v48 = vpop.f32.mrb[3].mxu0 }
 0x291   :  { %280 = vst [vmem:[%s480_s5] sm:$0xff] %v277_v47 }

</bundles_post_ra>
